<compile_context>
chip_gen: v7x
topology: tpu7x:2x2x1
jax: 0.10.0
libtpu: 0.0.40
codegen_flags: <defaults>
</compile_context>

<pallas_src>
import functools

import jax
import jax.numpy as jnp
from jax.experimental import pallas as pl
from jax.experimental.pallas import tpu as pltpu

LOG_STD_MIN = -20.0
LOG_STD_MAX = 2.0


def _round_up(x, m):
    return ((x + m - 1) // m) * m


def _cdiv(a, b):
    return -(-a // b)


def _actor_kernel(obs_ref, eps_ref, w1_ref, bhid_ref, w2_ref, whead_ref,
                  bhead_ref, out_ref, *, out_dim):
    x = obs_ref[...]                                        # [TB, in_dim] bf16

    # hidden layer 1: Linear + ReLU (bf16 MXU operands, f32 accumulate)
    h = jnp.dot(x, w1_ref[...],
                preferred_element_type=jnp.float32) + bhid_ref[0]
    h = jnp.maximum(h, 0.0)

    # hidden layer 2: Linear + ReLU
    h = jnp.dot(h.astype(jnp.bfloat16), w2_ref[...],
                preferred_element_type=jnp.float32) + bhid_ref[1]
    h = jnp.maximum(h, 0.0)

    # single lane-packed head matmul: lanes [0,out_dim) = mu_pre,
    # lanes [out_dim,2*out_dim) = log_std_pre, rest zero.
    head = jnp.dot(h.astype(jnp.bfloat16), whead_ref[...],
                   preferred_element_type=jnp.float32) + bhead_ref[...]

    # one whole-slab tanh (EUP) covers both heads, then static lane slices.
    t = jnp.tanh(head)
    mu = t[:, :out_dim]
    t_ls = t[:, out_dim:2 * out_dim]
    log_std = LOG_STD_MIN + 0.5 * (LOG_STD_MAX - LOG_STD_MIN) * (t_ls + 1.0)
    std = jnp.exp(log_std)

    # reparameterized sample: z = mu + std * eps   (Normal(mu, std).rsample())
    eps = eps_ref[...]
    z = mu + std * eps
    action = jnp.tanh(z)

    # Normal(mu, std).log_prob(z) with (z - mu)/std == eps, plus tanh correction.
    # TODO(synk): log(1 - a^2 + 1e-7) kept bit-for-bit with the PyTorch module;
    # a numerically stabler 2*(log2 - z - softplus(-2z)) form exists but would
    # change semantics slightly.
    log_prob = -0.5 * eps * eps - log_std - 0.5 * jnp.log(2.0 * jnp.pi)
    log_prob = log_prob - jnp.log(1.0 - action * action + 1e-7)
    logp = jnp.sum(log_prob, axis=-1, keepdims=True)        # [TB, 1]

    # single store: [action | log_prob]  -> (TB, out_dim + 1)
    out_ref[...] = jnp.concatenate([action, logp], axis=-1)


def _choose_batch_tile(B, block_b):
    """Tile size: minimize padding, keep >=2 grid steps when possible (v7x)."""
    B8 = _round_up(max(B, 1), 8)
    n_steps = max(1, _cdiv(B8, block_b))
    if n_steps == 1 and B8 >= 16:
        n_steps = 2                      # let both v7x TensorCores run
    TB = _round_up(_cdiv(B8, n_steps), 8)
    B_pad = n_steps * TB
    return TB, B_pad, n_steps


def feed_forward_actor(obs, params, eps, *, block_b=1024):
    """FeedForwardActor forward pass (test=False path) as one Pallas call.

    obs:    [B, in_dim] float32 (cast to bf16 before the call)
    params: dict from init_params (weights stored [in, out], biases [1, out])
    eps:    [B, out_dim] float32 standard-normal noise (rsample noise)
    returns (action [B, out_dim], log_prob [B, 1])
    """
    B, in_dim = obs.shape
    hidden_dim = params["w1"].shape[1]
    out_dim = params["w_mu"].shape[1]
    head_w = _round_up(2 * out_dim, 128)     # lane-dense packed head width

    # ---- wrapper-side layout packing (do once per parameter set) -----------
    w1 = params["w1"].astype(jnp.bfloat16)                       # [in, hid]
    w2 = params["w2"].astype(jnp.bfloat16)                       # [hid, hid]
    b_hidden = jnp.stack([params["b1"], params["b2"]],
                         axis=0).astype(jnp.float32)             # [2, 1, hid]

    w_head = jnp.zeros((hidden_dim, head_w), jnp.float32)
    w_head = w_head.at[:, :out_dim].set(params["w_mu"])
    w_head = w_head.at[:, out_dim:2 * out_dim].set(params["w_ls"])
    w_head = w_head.astype(jnp.bfloat16)                         # [hid, 128]
    b_head = jnp.zeros((1, head_w), jnp.float32)
    b_head = b_head.at[:, :out_dim].set(params["b_mu"])
    b_head = b_head.at[:, out_dim:2 * out_dim].set(params["b_ls"])  # [1, 128]

    # ---- batch tiling -------------------------------------------------------
    TB, B_pad, n_steps = _choose_batch_tile(B, block_b)
    obs_b = obs.astype(jnp.bfloat16)         # halves obs HBM read; same math
    if B_pad != B:
        obs_b = jnp.pad(obs_b, ((0, B_pad - B), (0, 0)))
        eps_p = jnp.pad(eps, ((0, B_pad - B), (0, 0)))
    else:
        eps_p = eps
    grid = (n_steps,)

    # ---- advisory cost estimate --------------------------------------------
    flops = 2 * B_pad * (in_dim * hidden_dim + hidden_dim * hidden_dim
                         + hidden_dim * head_w)
    transcendentals = 6 * B_pad * out_dim     # 3 tanh, 1 exp, 2 log per lane
    bytes_accessed = int(
        obs_b.size * 2 + eps_p.size * 4 + B_pad * (out_dim + 1) * 4
        + w1.size * 2 + w2.size * 2 + w_head.size * 2
        + b_hidden.size * 4 + b_head.size * 4)

    kernel = functools.partial(_actor_kernel, out_dim=out_dim)

    packed = pl.pallas_call(
        kernel,
        out_shape=jax.ShapeDtypeStruct((B_pad, out_dim + 1), jnp.float32),
        grid=grid,
        in_specs=[
            pl.BlockSpec((TB, in_dim), lambda i: (i, 0)),               # obs (streamed, bf16)
            pl.BlockSpec((TB, out_dim), lambda i: (i, 0)),              # eps (streamed, f32)
            pl.BlockSpec((in_dim, hidden_dim), lambda i: (0, 0)),       # w1 (resident)
            pl.BlockSpec((2, 1, hidden_dim), lambda i: (0, 0, 0)),      # b1|b2
            pl.BlockSpec((hidden_dim, hidden_dim), lambda i: (0, 0)),   # w2
            pl.BlockSpec((hidden_dim, head_w), lambda i: (0, 0)),       # packed head W
            pl.BlockSpec((1, head_w), lambda i: (0, 0)),                # packed head b
        ],
        out_specs=pl.BlockSpec((TB, out_dim + 1), lambda i: (i, 0)),
        compiler_params=pltpu.CompilerParams(
            dimension_semantics=("parallel",)),
        cost_estimate=pl.CostEstimate(
            flops=flops, transcendentals=transcendentals,
            bytes_accessed=bytes_accessed),
    )(obs_b, eps_p, w1, b_hidden, w2, w_head, b_head)

    action = packed[:B, :out_dim]
    log_prob = packed[:B, out_dim:out_dim + 1]
    return action, log_prob


def feed_forward_actor_ref(obs, params, eps):
    """Pure-JAX f32 reference of the same forward pass (for validation)."""
    h = jnp.maximum(obs @ params["w1"] + params["b1"], 0.0)
    h = jnp.maximum(h @ params["w2"] + params["b2"], 0.0)
    mu = jnp.tanh(h @ params["w_mu"] + params["b_mu"])
    t = jnp.tanh(h @ params["w_ls"] + params["b_ls"])
    log_std = LOG_STD_MIN + 0.5 * (LOG_STD_MAX - LOG_STD_MIN) * (t + 1.0)
    std = jnp.exp(log_std)
    z = mu + std * eps
    action = jnp.tanh(z)
    log_prob = (-0.5 * eps * eps - log_std - 0.5 * jnp.log(2.0 * jnp.pi)
                - jnp.log(1.0 - action * action + 1e-7))
    return action, jnp.sum(log_prob, axis=-1, keepdims=True)


def init_params(key, in_dim, out_dim, hidden_dim):
    """Deterministic parameter init mirroring the PyTorch module.

    Hidden Linear layers: PyTorch default uniform(-1/sqrt(fan_in), 1/sqrt(fan_in)).
    mu / log_std layers:  init_layer_uniform -> uniform(-0.003, 0.003).
    Weights are stored transposed ([in, out]) relative to nn.Linear.
    """
    ks = jax.random.split(key, 8)

    def lin(kw, kb, fan_in, fan_out, bound):
        w = jax.random.uniform(kw, (fan_in, fan_out), jnp.float32, -bound, bound)
        b = jax.random.uniform(kb, (1, fan_out), jnp.float32, -bound, bound)
        return w, b

    b1_bound = 1.0 / float(jnp.sqrt(in_dim))
    b2_bound = 1.0 / float(jnp.sqrt(hidden_dim))

    w1, b1 = lin(ks[0], ks[1], in_dim, hidden_dim, b1_bound)
    w2, b2 = lin(ks[2], ks[3], hidden_dim, hidden_dim, b2_bound)
    w_mu, b_mu = lin(ks[4], ks[5], hidden_dim, out_dim, 0.003)
    w_ls, b_ls = lin(ks[6], ks[7], hidden_dim, out_dim, 0.003)

    return {
        "w1": w1, "b1": b1,
        "w2": w2, "b2": b2,
        "w_mu": w_mu, "b_mu": b_mu,
        "w_ls": w_ls, "b_ls": b_ls,
    }


if __name__ == "__main__":
    # Small shapes consistent with the module: batch=8 observations of
    # in_dim=32 features, hidden_dim=256 (module default), out_dim=8 actions.
    B, IN_DIM, HIDDEN_DIM, OUT_DIM = 8, 32, 256, 8

    key = jax.random.PRNGKey(0)
    k_obs, k_eps, k_params = jax.random.split(key, 3)

    obs = jax.random.normal(k_obs, (B, IN_DIM), jnp.float32)
    eps = jax.random.normal(k_eps, (B, OUT_DIM), jnp.float32)  # rsample noise
    params = init_params(k_params, IN_DIM, OUT_DIM, HIDDEN_DIM)

    action, log_prob = feed_forward_actor(obs, params, eps)
    jax.block_until_ready((action, log_prob))

    assert action.shape == (B, OUT_DIM)
    assert log_prob.shape == (B, 1)
    assert bool(jnp.all(jnp.isfinite(action)))
    assert bool(jnp.all(jnp.isfinite(log_prob)))

    # Loose tolerance: kernel uses bf16 matmul operands (f32 accumulate).
    ref_action, ref_logp = feed_forward_actor_ref(obs, params, eps)
    assert bool(jnp.allclose(action, ref_action, atol=5e-2, rtol=5e-2))
    assert bool(jnp.allclose(log_prob, ref_logp, atol=5e-1, rtol=5e-2))

    print("KERNEL_OK")
</pallas_src>

<mosaic_0001>
module attributes {stable_mosaic.version = 11 : i64} {
  func.func @_actor_kernel(%arg0: i32, %arg1: memref<8x32xbf16, #tpu.memory_space<vmem>>, %arg2: memref<8x8xf32, #tpu.memory_space<vmem>>, %arg3: memref<32x256xbf16, #tpu.memory_space<vmem>>, %arg4: memref<2x1x256xf32, #tpu.memory_space<vmem>>, %arg5: memref<256x256xbf16, #tpu.memory_space<vmem>>, %arg6: memref<256x128xbf16, #tpu.memory_space<vmem>>, %arg7: memref<1x128xf32, #tpu.memory_space<vmem>>, %arg8: memref<8x9xf32, #tpu.memory_space<vmem>>) attributes {dimension_semantics = [#tpu.dimension_semantics<parallel>], iteration_bounds = array<i64: 1>, scalar_prefetch = 0 : i64, scratch_operands = 0 : i64, tpu.core_type = #tpu.core_type<tc>, window_params = [{transform_indices = @transform_0, window_bounds = array<i64: 8, 32>}, {transform_indices = @transform_1, window_bounds = array<i64: 8, 8>}, {pipeline_mode = #tpu.pipeline_mode<synchronous>, transform_indices = @transform_2, window_bounds = array<i64: 32, 256>}, {pipeline_mode = #tpu.pipeline_mode<synchronous>, transform_indices = @transform_3, window_bounds = array<i64: 2, 1, 256>}, {pipeline_mode = #tpu.pipeline_mode<synchronous>, transform_indices = @transform_4, window_bounds = array<i64: 256, 256>}, {pipeline_mode = #tpu.pipeline_mode<synchronous>, transform_indices = @transform_5, window_bounds = array<i64: 256, 128>}, {pipeline_mode = #tpu.pipeline_mode<synchronous>, transform_indices = @transform_6, window_bounds = array<i64: 1, 128>}, {transform_indices = @transform_7, window_bounds = array<i64: 8, 9>}]} {
    %c0 = arith.constant 0 : index
    %c0_0 = arith.constant 0 : index
    %0 = vector.load %arg1[%c0, %c0_0] : memref<8x32xbf16, #tpu.memory_space<vmem>>, vector<8x32xbf16>
    %c0_1 = arith.constant 0 : index
    %c0_2 = arith.constant 0 : index
    %1 = vector.load %arg3[%c0_1, %c0_2] : memref<32x256xbf16, #tpu.memory_space<vmem>>, vector<32x256xbf16>
    %cst = arith.constant dense<0.000000e+00> : vector<8x256xf32>
    %2 = tpu.matmul %0, %1, %cst {dimension_numbers = #tpu.dot_dimension_numbers<[1], [0], [0], [1], [0, 0, 1, 1], [], []>} : vector<8x32xbf16>, vector<32x256xbf16>, vector<8x256xf32> -> vector<8x256xf32>
    %c0_3 = arith.constant 0 : index
    %c0_4 = arith.constant 0 : index
    %c0_5 = arith.constant 0 : index
    %3 = vector.load %arg4[%c0_3, %c0_4, %c0_5] : memref<2x1x256xf32, #tpu.memory_space<vmem>>, vector<1x1x256xf32>
    %4 = vector.shape_cast %3 : vector<1x1x256xf32> to vector<1x256xf32>
    %5 = vector.broadcast %4 : vector<1x256xf32> to vector<8x256xf32>
    %6 = arith.addf %2, %5 : vector<8x256xf32>
    %cst_6 = arith.constant 0.000000e+00 : f32
    %7 = vector.broadcast %cst_6 : f32 to vector<8x256xf32>
    %8 = arith.maximumf %6, %7 : vector<8x256xf32>
    %9 = arith.truncf %8 : vector<8x256xf32> to vector<8x256xbf16>
    %c0_7 = arith.constant 0 : index
    %c0_8 = arith.constant 0 : index
    %10 = vector.load %arg5[%c0_7, %c0_8] : memref<256x256xbf16, #tpu.memory_space<vmem>>, vector<256x256xbf16>
    %cst_9 = arith.constant dense<0.000000e+00> : vector<8x256xf32>
    %11 = tpu.matmul %9, %10, %cst_9 {dimension_numbers = #tpu.dot_dimension_numbers<[1], [0], [0], [1], [0, 0, 1, 1], [], []>} : vector<8x256xbf16>, vector<256x256xbf16>, vector<8x256xf32> -> vector<8x256xf32>
    %c1 = arith.constant 1 : index
    %c0_10 = arith.constant 0 : index
    %c0_11 = arith.constant 0 : index
    %12 = vector.load %arg4[%c1, %c0_10, %c0_11] : memref<2x1x256xf32, #tpu.memory_space<vmem>>, vector<1x1x256xf32>
    %13 = vector.shape_cast %12 : vector<1x1x256xf32> to vector<1x256xf32>
    %14 = vector.broadcast %13 : vector<1x256xf32> to vector<8x256xf32>
    %15 = arith.addf %11, %14 : vector<8x256xf32>
    %cst_12 = arith.constant 0.000000e+00 : f32
    %16 = vector.broadcast %cst_12 : f32 to vector<8x256xf32>
    %17 = arith.maximumf %15, %16 : vector<8x256xf32>
    %18 = arith.truncf %17 : vector<8x256xf32> to vector<8x256xbf16>
    %c0_13 = arith.constant 0 : index
    %c0_14 = arith.constant 0 : index
    %19 = vector.load %arg6[%c0_13, %c0_14] : memref<256x128xbf16, #tpu.memory_space<vmem>>, vector<256x128xbf16>
    %cst_15 = arith.constant dense<0.000000e+00> : vector<8x128xf32>
    %20 = tpu.matmul %18, %19, %cst_15 {dimension_numbers = #tpu.dot_dimension_numbers<[1], [0], [0], [1], [0, 0, 1, 1], [], []>} : vector<8x256xbf16>, vector<256x128xbf16>, vector<8x128xf32> -> vector<8x128xf32>
    %c0_16 = arith.constant 0 : index
    %c0_17 = arith.constant 0 : index
    %21 = vector.load %arg7[%c0_16, %c0_17] : memref<1x128xf32, #tpu.memory_space<vmem>>, vector<1x128xf32>
    %22 = vector.broadcast %21 : vector<1x128xf32> to vector<8x128xf32>
    %23 = arith.addf %20, %22 : vector<8x128xf32>
    %24 = math.tanh %23 : vector<8x128xf32>
    %25 = vector.extract_strided_slice %24 {offsets = [0, 0], sizes = [8, 8], strides = [1, 1]} : vector<8x128xf32> to vector<8x8xf32>
    %26 = vector.extract_strided_slice %24 {offsets = [0, 8], sizes = [8, 8], strides = [1, 1]} : vector<8x128xf32> to vector<8x8xf32>
    %cst_18 = arith.constant 1.000000e+00 : f32
    %27 = vector.broadcast %cst_18 : f32 to vector<8x8xf32>
    %28 = arith.addf %26, %27 : vector<8x8xf32>
    %cst_19 = arith.constant 1.100000e+01 : f32
    %29 = vector.broadcast %cst_19 : f32 to vector<8x8xf32>
    %30 = arith.mulf %29, %28 : vector<8x8xf32>
    %cst_20 = arith.constant -2.000000e+01 : f32
    %31 = vector.broadcast %cst_20 : f32 to vector<8x8xf32>
    %32 = arith.addf %31, %30 : vector<8x8xf32>
    %33 = math.exp %32 : vector<8x8xf32>
    %c0_21 = arith.constant 0 : index
    %c0_22 = arith.constant 0 : index
    %34 = vector.load %arg2[%c0_21, %c0_22] : memref<8x8xf32, #tpu.memory_space<vmem>>, vector<8x8xf32>
    %35 = arith.mulf %33, %34 : vector<8x8xf32>
    %36 = arith.addf %25, %35 : vector<8x8xf32>
    %37 = math.tanh %36 : vector<8x8xf32>
    %cst_23 = arith.constant -5.000000e-01 : f32
    %38 = vector.broadcast %cst_23 : f32 to vector<8x8xf32>
    %39 = arith.mulf %38, %34 : vector<8x8xf32>
    %40 = arith.mulf %39, %34 : vector<8x8xf32>
    %41 = arith.subf %40, %32 : vector<8x8xf32>
    %cst_24 = arith.constant 6.28318548 : f32
    %42 = math.log %cst_24 : f32
    %cst_25 = arith.constant 5.000000e-01 : f32
    %43 = arith.mulf %cst_25, %42 : f32
    %44 = vector.broadcast %43 : f32 to vector<8x8xf32>
    %45 = arith.subf %41, %44 : vector<8x8xf32>
    %46 = arith.mulf %37, %37 : vector<8x8xf32>
    %cst_26 = arith.constant 1.000000e+00 : f32
    %47 = vector.broadcast %cst_26 : f32 to vector<8x8xf32>
    %48 = arith.subf %47, %46 : vector<8x8xf32>
    %cst_27 = arith.constant 1.000000e-07 : f32
    %49 = vector.broadcast %cst_27 : f32 to vector<8x8xf32>
    %50 = arith.addf %48, %49 : vector<8x8xf32>
    %51 = math.log %50 : vector<8x8xf32>
    %52 = arith.subf %45, %51 : vector<8x8xf32>
    %cst_28 = arith.constant dense<0.000000e+00> : vector<8xf32>
    %53 = vector.multi_reduction <add>, %52, %cst_28 [1] : vector<8x8xf32> to vector<8xf32>
    %54 = vector.shape_cast %53 : vector<8xf32> to vector<8x1xf32>
    %55 = tpu.concatenate %37, %54 in 1 : vector<8x8xf32>, vector<8x1xf32> -> vector<8x9xf32>
    %c0_29 = arith.constant 0 : index
    %c0_30 = arith.constant 0 : index
    %56 = vector.load %arg8[%c0_29, %c0_30] : memref<8x9xf32, #tpu.memory_space<vmem>>, vector<8x9xf32>
    tpu.vector_store %arg8[%c0_29, %c0_30], %55 {strides = array<i32>} : memref<8x9xf32, #tpu.memory_space<vmem>>, vector<8x9xf32>,
    return
  }
  func.func @transform_0(%arg0: i32) -> (i32, i32) {
    %c0_i32 = arith.constant 0 : i32
    %c0_i32_0 = arith.constant 0 : i32
    return %arg0, %c0_i32 : i32, i32
  }
  func.func @transform_1(%arg0: i32) -> (i32, i32) {
    %c0_i32 = arith.constant 0 : i32
    %c0_i32_0 = arith.constant 0 : i32
    return %arg0, %c0_i32 : i32, i32
  }
  func.func @transform_2(%arg0: i32) -> (i32, i32) {
    %c0_i32 = arith.constant 0 : i32
    %c0_i32_0 = arith.constant 0 : i32
    %c0_i32_1 = arith.constant 0 : i32
    return %c0_i32, %c0_i32_0 : i32, i32
  }
  func.func @transform_3(%arg0: i32) -> (i32, i32, i32) {
    %c0_i32 = arith.constant 0 : i32
    %c0_i32_0 = arith.constant 0 : i32
    %c0_i32_1 = arith.constant 0 : i32
    %c0_i32_2 = arith.constant 0 : i32
    return %c0_i32, %c0_i32_0, %c0_i32_1 : i32, i32, i32
  }
  func.func @transform_4(%arg0: i32) -> (i32, i32) {
    %c0_i32 = arith.constant 0 : i32
    %c0_i32_0 = arith.constant 0 : i32
    %c0_i32_1 = arith.constant 0 : i32
    return %c0_i32, %c0_i32_0 : i32, i32
  }
  func.func @transform_5(%arg0: i32) -> (i32, i32) {
    %c0_i32 = arith.constant 0 : i32
    %c0_i32_0 = arith.constant 0 : i32
    %c0_i32_1 = arith.constant 0 : i32
    return %c0_i32, %c0_i32_0 : i32, i32
  }
  func.func @transform_6(%arg0: i32) -> (i32, i32) {
    %c0_i32 = arith.constant 0 : i32
    %c0_i32_0 = arith.constant 0 : i32
    %c0_i32_1 = arith.constant 0 : i32
    return %c0_i32, %c0_i32_0 : i32, i32
  }
  func.func @transform_7(%arg0: i32) -> (i32, i32) {
    %c0_i32 = arith.constant 0 : i32
    %c0_i32_0 = arith.constant 0 : i32
    return %arg0, %c0_i32 : i32, i32
  }
}

</mosaic_0001>

<bundles_post_ra>
// kernel: tpu_custom_call.1
= control target key start
LH: loop header
LB: loop body
LE: loop exit
PB: predicated region body
PF: predicated region fallthrough
CT: control target
= control target key end

     0   :  { %12 = vsyncpa [#allocation3], 0  ;;  %s1107_s0 = inlined_call_operand.hbm [shape: bf16[8,32], index: 0, kind: input, shape index: {}]   ;;  %s1108_s1 = inlined_call_operand.hbm [shape: f32[8,8], index: 1, kind: input, shape index: {}]   ;;  %s1109_s2 = inlined_call_operand.hbm [shape: bf16[32,256], index: 2, kind: input, shape index: {}]   ;;  %s1110_s3 = inlined_call_operand.vmem [shape: f32[2,1,256], index: 3, kind: input, shape index: {}]   ;;  %s1111_s4 = inlined_call_operand.hbm [shape: bf16[256,256], index: 4, kind: input, shape index: {}]   ;;  %s1112_s5 = inlined_call_operand.hbm [shape: bf16[256,128], index: 5, kind: input, shape index: {}]   ;;  %s1113_s6 = inlined_call_operand.vmem [shape: f32[1,128], index: 6, kind: input, shape index: {}]   ;;  %s1114_s7 = inlined_call_operand.hbm [shape: f32[8,9], index: 7, kind: output, shape index: {}]  }
   0x1   :  { %13 = vsyncpa [#allocation6], 0 }
   0x2   :  { %14 = vsyncpa [#allocation9], 0 }
   0x3   :  { %15 = vsyncpa [#allocation4], 0  ;;  %s967_s24 = smov [#allocation5]   ;;  %s827_s28 = scalar_lea.hbm %s1108_s1, 128 }
   0x4   :  { %s32_s25 = sshll.u32 %s967_s24, 4  ;;  %p828_p0 = scmp.ne.s32.totalorder %s1108_s1, %s827_s28  ;;  %s33_s25 = int_to_ptr.vmem [resolvable:$true] %s32_s25 }
   0x5   :  { %p831_p1 = scmp.lt.u32.totalorder %s827_s28, %s1108_s1 }
   0x7   :  { %p833_p2 = pnand %p831_p1, %p828_p0 }
   0x9   :  { %836 = shalt.err (!%p833_p2)
}
   0xa   :  { %s837_s10 = scalar_lea.vmem %s33_s25, 128  ;;  %p842_p4 = scmp.lt.s32.totalorder %s33_s25, %s33_s25 }
   0xb   :  { %p838_p3 = scmp.ne.s32.totalorder %s33_s25, %s837_s10  ;;  %p843_p5 = scmp.lt.s32.totalorder %s837_s10, %s837_s10 }
   0xd   :  { %p844_p6 = por %p843_p5, %p842_p4 }
   0xf   :  { %p845_p7 = pnand %p844_p6, %p838_p3 }
  0x11   :  { %848 = shalt.err (!%p845_p7)
}
  0x12   :  { %35 = dma.hbm_to_vmem [thread:$0]  %s1108_s1, 128, %s33_s25, [#allocation6]  }
  0x13   :  { %s968_s13 = smov [#allocation8]   ;;  %s969_s15 = smov [#allocation2]  }
  0x14   :  { %s55_s14 = sshll.u32 %s968_s13, 4  ;;  %s22_s16 = sshll.u32 %s969_s15, 4  ;;  %s56_s14 = int_to_ptr.vmem [resolvable:$true] %s55_s14  ;;  %s23_s16 = int_to_ptr.vmem [resolvable:$true] %s22_s16 }
  0x15   :  { %s849_s19 = scalar_lea.hbm %s1111_s4, 4096 }
  0x16   :  { %p850_p8 = scmp.ne.s32.totalorder %s1111_s4, %s849_s19  ;;  %p853_p9 = scmp.lt.u32.totalorder %s849_s19, %s1111_s4 }
  0x18   :  { %p855_p10 = pnand %p853_p9, %p850_p8 }
  0x1a   :  { %858 = shalt.err (!%p855_p10)
}
  0x1b   :  { %s859_s1 = scalar_lea.vmem %s56_s14, 4096  ;;  %p864_p12 = scmp.lt.s32.totalorder %s56_s14, %s56_s14 }
  0x1c   :  { %p860_p11 = scmp.ne.s32.totalorder %s56_s14, %s859_s1  ;;  %p865_p13 = scmp.lt.s32.totalorder %s859_s1, %s859_s1 }
  0x1e   :  { %p866_p0 = por %p865_p13, %p864_p12 }
  0x20   :  { %p867_p1 = pnand %p866_p0, %p860_p11 }
  0x22   :  { %870 = shalt.err (!%p867_p1)
}
  0x23   :  { %s970_s24 = smov 128   ;;  %s971_s25 = smov 8  }
  0x24   :  { %61 = dma.hbm_to_vmem [thread:$0]  %s1111_s4, 4096, %s56_s14, [#allocation9], %s970_s24, %s970_s24, %s971_s25  }
  0x25   :  { %s871_s30 = scalar_lea.hbm %s1107_s0, 64 }
  0x26   :  { %p872_p2 = scmp.ne.s32.totalorder %s1107_s0, %s871_s30  ;;  %p875_p3 = scmp.lt.u32.totalorder %s871_s30, %s1107_s0 }
  0x28   :  { %p877_p4 = pnand %p875_p3, %p872_p2 }
  0x2a   :  { %880 = shalt.err (!%p877_p4)
}
  0x2b   :  { %s881_s12 = scalar_lea.vmem %s23_s16, 64  ;;  %p886_p6 = scmp.lt.s32.totalorder %s23_s16, %s23_s16 }
  0x2c   :  { %p882_p5 = scmp.ne.s32.totalorder %s23_s16, %s881_s12  ;;  %p887_p7 = scmp.lt.s32.totalorder %s881_s12, %s881_s12 }
  0x2e   :  { %p888_p8 = por %p887_p7, %p886_p6 }
  0x30   :  { %p889_p9 = pnand %p888_p8, %p882_p5 }
  0x32   :  { %892 = shalt.err (!%p889_p9)
}
  0x33   :  { %25 = dma.hbm_to_vmem [thread:$0]  %s1107_s0, 64, %s23_s16, [#allocation3]  }
  0x34   :  { %s972_s14 = smov [#allocation7]   ;;  %s973_s17 = smov [#allocation10]  }
  0x35   :  { %s41_s15 = sshll.u32 %s972_s14, 4  ;;  %s67_s18 = sshll.u32 %s973_s17, 4  ;;  %s42_s15 = int_to_ptr.vmem [resolvable:$true] %s41_s15  ;;  %s68_s18 = int_to_ptr.vmem [resolvable:$true] %s67_s18 }
  0x36   :  { %s893_s21 = scalar_lea.hbm %s1109_s2, 512 }
  0x37   :  { %p894_p10 = scmp.ne.s32.totalorder %s1109_s2, %s893_s21  ;;  %p897_p11 = scmp.lt.u32.totalorder %s893_s21, %s1109_s2 }
  0x39   :  { %p899_p12 = pnand %p897_p11, %p894_p10 }
  0x3b   :  { %902 = shalt.err (!%p899_p12)
}
  0x3c   :  { %s903_s0 = scalar_lea.vmem %s42_s15, 512  ;;  %p908_p0 = scmp.lt.s32.totalorder %s42_s15, %s42_s15 }
  0x3d   :  { %p904_p13 = scmp.ne.s32.totalorder %s42_s15, %s903_s0  ;;  %p909_p1 = scmp.lt.s32.totalorder %s903_s0, %s903_s0 }
  0x3f   :  { %p910_p2 = por %p909_p1, %p908_p0 }
  0x41   :  { %p911_p3 = pnand %p910_p2, %p904_p13 }
  0x43   :  { %914 = shalt.err (!%p911_p3)
}
  0x44   :  { %47 = dma.hbm_to_vmem [thread:$0]  %s1109_s2, 512, %s42_s15, [#allocation6], %s970_s24, %s970_s24, %s971_s25  }
  0x45   :  { %s915_s30 = scalar_lea.hbm %s1112_s5, 2048 }
  0x46   :  { %p916_p4 = scmp.ne.s32.totalorder %s1112_s5, %s915_s30  ;;  %p919_p5 = scmp.lt.u32.totalorder %s915_s30, %s1112_s5 }
  0x48   :  { %p921_p6 = pnand %p919_p5, %p916_p4 }
  0x4a   :  { %924 = shalt.err (!%p921_p6)
}
  0x4b   :  { %s925_s12 = scalar_lea.vmem %s68_s18, 2048  ;;  %p930_p8 = scmp.lt.s32.totalorder %s68_s18, %s68_s18 }
  0x4c   :  { %p926_p7 = scmp.ne.s32.totalorder %s68_s18, %s925_s12  ;;  %p931_p9 = scmp.lt.s32.totalorder %s925_s12, %s925_s12 }
  0x4e   :  { %p932_p10 = por %p931_p9, %p930_p8 }
  0x50   :  { %p933_p11 = pnand %p932_p10, %p926_p7 }
  0x52   :  { %936 = shalt.err (!%p933_p11)
}
  0x53   :  { %s974_s2 = smov 64   ;;  %s975_s24 = smov 4  }
  0x54   :  { %73 = dma.hbm_to_vmem [thread:$0]  %s1112_s5, 2048, %s68_s18, [#allocation9], %s974_s2, %s974_s2, %s975_s24  }
  0x55   :  { %959 = dma.done.wait [#allocation3], 64  }
  0x56   :  { %960 = vsyncadd [#allocation3], 4294967232 }
  0x57   :  { %961 = dma.done.wait [#allocation6], 640  }
  0x58   :  { %962 = vsyncadd [#allocation6], 4294966656 }
  0x59   :  { %963 = dma.done.wait [#allocation9], 6144  }
  0x5a   :  { %964 = vsyncadd [#allocation9], 4294961152  ;;  %v976_v0 = vmov 0   ;;  %v749_v1 = vld [vmem:[#allocation7 + $0x4] ss:$8 sps:$4 sm:$0xff]   ;;  %vm129_vm0 = vcmask 261120   ;;  %v99_v50 = vlaneseq }
  0x5b   :  { %165 = vmatprep.mubr.bf16.mxu0 %v976_v0  ;;  %v751_v2 = vld [vmem:[#allocation7] ss:$8 sps:$4 sm:$0xff]   ;;  %133 = vmatprep.subr.bf16.mxu0 %v749_v1  ;;  %v752_v3 = vld [vmem:[#allocation7 + $0x14] ss:$8 sps:$4 sm:$0xff]   ;;  %v754_v4 = vld [vmem:[#allocation7 + $0x10] ss:$8 sps:$4 sm:$0xff]  }
  0x5c   :  { %134 = vmatpush1.bf16.msra.mxu0 %v751_v2  ;;  %v755_v5 = vld [vmem:[#allocation8 + $0x4] ss:$8 sps:$4 sm:$0xff]   ;;  %v757_v6 = vld [vmem:[#allocation8] ss:$8 sps:$4 sm:$0xff]   ;;  %v758_v7 = vld [vmem:[#allocation8 + $0x14] ss:$8 sps:$4 sm:$0xff]  }
  0x5d   :  { %135 = vmatprep.subr.bf16.mxu0 %v752_v3  ;;  %383 = vmatprep.subr.bf16.mxu1 %v755_v5  ;;  %v92_v8 = vld [vmem:[#allocation2] sm:$0xf]  ;;  %v760_v9 = vld [vmem:[#allocation8 + $0x10] ss:$8 sps:$4 sm:$0xff]   ;;  %v761_v10 = vld [vmem:[#allocation8 + $0x24] ss:$8 sps:$4 sm:$0xff]  }
  0x5e   :  { %384 = vmatpush1.bf16.msra.mxu1 %v757_v6  ;;  %v763_v11 = vld [vmem:[#allocation8 + $0x20] ss:$8 sps:$4 sm:$0xff]   ;;  %v764_v12 = vld [vmem:[#allocation8 + $0x34] ss:$8 sps:$4 sm:$0xff]   ;;  %v766_v13 = vld [vmem:[#allocation8 + $0x30] ss:$8 sps:$4 sm:$0xff]  }
  0x5f   :  { %385 = vmatprep.subr.bf16.mxu1 %v758_v7  ;;  %v767_v14 = vld [vmem:[#allocation8 + $0x44] ss:$8 sps:$4 sm:$0xff]   ;;  %v769_v15 = vld [vmem:[#allocation8 + $0x40] ss:$8 sps:$4 sm:$0xff]   ;;  %v770_v16 = vld [vmem:[#allocation8 + $0x54] ss:$8 sps:$4 sm:$0xff]  }
  0x60   :  { %136 = vmatpush1.bf16.msra.mxu0 %v754_v4  ;;  %v772_v17 = vld [vmem:[#allocation8 + $0x50] ss:$8 sps:$4 sm:$0xff]   ;;  %v773_v18 = vld [vmem:[#allocation8 + $0x64] ss:$8 sps:$4 sm:$0xff]   ;;  %v775_v19 = vld [vmem:[#allocation8 + $0x60] ss:$8 sps:$4 sm:$0xff]  }
  0x61   :  { %v776_v20 = vld [vmem:[#allocation8 + $0x74] ss:$8 sps:$4 sm:$0xff]   ;;  %v778_v21 = vld [vmem:[#allocation8 + $0x70] ss:$8 sps:$4 sm:$0xff]   ;;  %v779_v22 = vld [vmem:[#allocation8 + $0x84] ss:$8 sps:$4 sm:$0xff]  }
  0x62   :  { %386 = vmatpush1.bf16.msra.mxu1 %v760_v9  ;;  %v781_v23 = vld [vmem:[#allocation8 + $0x80] ss:$8 sps:$4 sm:$0xff]   ;;  %v782_v24 = vld [vmem:[#allocation8 + $0x94] ss:$8 sps:$4 sm:$0xff]   ;;  %v784_v25 = vld [vmem:[#allocation8 + $0x90] ss:$8 sps:$4 sm:$0xff]  }
  0x63   :  { %663 = vmatmul.mubr.msk.bf16.vlgmr.msra.gmra.mrb[0].mxu0 %vm129_vm0, %v92_v8  ;;  %387 = vmatprep.subr.bf16.mxu1 %v761_v10  ;;  %v785_v26 = vld [vmem:[#allocation8 + $0xa4] ss:$8 sps:$4 sm:$0xff]   ;;  %v787_v27 = vld [vmem:[#allocation8 + $0xa0] ss:$8 sps:$4 sm:$0xff]   ;;  %v788_v28 = vld [vmem:[#allocation8 + $0xb4] ss:$8 sps:$4 sm:$0xff]  }
  0x64   :  { %v790_v29 = vld [vmem:[#allocation8 + $0xb0] ss:$8 sps:$4 sm:$0xff]   ;;  %v791_v30 = vld [vmem:[#allocation8 + $0xc4] ss:$8 sps:$4 sm:$0xff]   ;;  %v793_v31 = vld [vmem:[#allocation8 + $0xc0] ss:$8 sps:$4 sm:$0xff]  }
  0x65   :  { %v794_v32 = vld [vmem:[#allocation8 + $0xd4] ss:$8 sps:$4 sm:$0xff]   ;;  %v796_v33 = vld [vmem:[#allocation8 + $0xd0] ss:$8 sps:$4 sm:$0xff]   ;;  %v797_v34 = vld [vmem:[#allocation8 + $0xe4] ss:$8 sps:$4 sm:$0xff]  }
  0x66   :  { %388 = vmatpush1.bf16.msra.mxu1 %v763_v11  ;;  %v799_v35 = vld [vmem:[#allocation8 + $0xe0] ss:$8 sps:$4 sm:$0xff]   ;;  %v800_v36 = vld [vmem:[#allocation8 + $0xf4] ss:$8 sps:$4 sm:$0xff]   ;;  %v802_v37 = vld [vmem:[#allocation8 + $0xf0] ss:$8 sps:$4 sm:$0xff]  }
  0x67   :  { %389 = vmatprep.subr.bf16.mxu1 %v764_v12  ;;  %v803_v38 = vld [vmem:[#allocation10 + $0x40] sm:$0xff]   ;;  %v805_v40 = vld [vmem:[#allocation10 + $0x48] sm:$0xff]   ;;  %v807_v42 = vld [vmem:[#allocation10 + $0x50] sm:$0xff]   ;;  %v100_v51 = vshrl.u32 %v99_v50, 7  ;;  %vm635_vm1 = vcmask 64512   ;;  %vm640_vm2 = vcmask 72704  }
  0x68   :  { %v804_v39 = vld [vmem:[#allocation10] sm:$0xff]   ;;  %715 = vmatprep.subr.bf16.mxu0 %v803_v38  ;;  %v806_v41 = vld [vmem:[#allocation10 + $0x8] sm:$0xff]   ;;  %v808_v43 = vld [vmem:[#allocation10 + $0x10] sm:$0xff]  }
  0x69   :  { %716 = vmatpush3.bf16.msra.mxu0 %v804_v39  ;;  %v809_v44 = vld [vmem:[#allocation10 + $0x58] sm:$0xff]   ;;  %v811_v46 = vld [vmem:[#allocation10 + $0x60] sm:$0xff]   ;;  %v813_v48 = vld [vmem:[#allocation10 + $0x68] sm:$0xff]   ;;  %v101_v52 = vsub.s32 0, %v100_v51  ;;  %v105_v54 = vsub.s32 1, %v100_v51 }
  0x6a   :  { %390 = vmatpush1.bf16.msra.mxu1 %v766_v13  ;;  %717 = vmatprep.subr.bf16.mxu0 %v805_v40  ;;  %v810_v45 = vld [vmem:[#allocation10 + $0x18] sm:$0xff]   ;;  %v812_v47 = vld [vmem:[#allocation10 + $0x20] sm:$0xff]   ;;  %v814_v49 = vld [vmem:[#allocation10 + $0x28] sm:$0xff]  }
  0x6b   :  { %391 = vmatprep.subr.bf16.mxu1 %v767_v14  ;;  %v97_v53 = vld [vmem:[%s1110_s3] sm:$0x3]  ;;  %v817_v5 = vld [vmem:[#allocation10 + $0x78] sm:$0xff]   ;;  %v664_v8 = vld [vmem:[%s1110_s3 + $0x2] sm:$0x3]  ;;  %s977_s3 = smov 120  }
  0x6c   :  { %v102_v55 = vrot.slane %v97_v53, %v101_v52  ;;  %v106_v56 = vrot.slane %v97_v53, %v105_v54  ;;  %v815_v3 = vld [vmem:[#allocation10 + $0x70] sm:$0xff]   ;;  %v818_v6 = vld [vmem:[#allocation10 + $0x38] sm:$0xff]   ;;  %v216_v9 = vrot.slane %v664_v8, %v101_v52  ;;  %v220_v10 = vrot.slane %v664_v8, %v105_v54 }
  0x6d   :  { %718 = vmatpush3.bf16.msra.mxu0 %v806_v41  ;;  %v816_v4 = vld [vmem:[#allocation10 + $0x30] sm:$0xff]   ;;  %v609_v7 = vld [vmem:[#allocation5] sm:$0xff] }
  0x6e   :  { %392 = vmatpush1.bf16.msra.mxu1 %v769_v15  ;;  %719 = vmatprep.subr.bf16.mxu0 %v807_v42  ;;  %v621_v42 = vmul.f32 -0.5, %v609_v7 }
  0x6f   :  { %393 = vmatprep.subr.bf16.mxu1 %v770_v16  ;;  %611 = vrot.lane.b32.xlu0 %v609_v7, %s971_s25 }
  0x71   :  { %720 = vmatpush3.bf16.msra.mxu0 %v808_v43  ;;  %v622_v43 = vmul.f32 %v621_v42, %v609_v7 }
  0x72   :  { %394 = vmatpush1.bf16.msra.mxu1 %v772_v17  ;;  %721 = vmatprep.subr.bf16.mxu0 %v809_v44 }
  0x73   :  { %395 = vmatprep.subr.bf16.mxu1 %v773_v18 }
  0x75   :  { %722 = vmatpush3.bf16.msra.mxu0 %v810_v45 }
  0x76   :  { %396 = vmatpush1.bf16.msra.mxu1 %v775_v19  ;;  %723 = vmatprep.subr.bf16.mxu0 %v811_v46 }
  0x77   :  { %397 = vmatprep.subr.bf16.mxu1 %v776_v20 }
  0x79   :  { %724 = vmatpush3.bf16.msra.mxu0 %v812_v47 }
  0x7a   :  { %398 = vmatpush1.bf16.msra.mxu1 %v778_v21  ;;  %725 = vmatprep.subr.bf16.mxu0 %v813_v48 }
  0x7b   :  { %399 = vmatprep.subr.bf16.mxu1 %v779_v22  ;;  %v697_v22 = vld [vmem:[%s1113_s6] ss:$0 sm:$0xff]  ;;  %s978_s6 = smov [#allocation11]  }
  0x7c   :  { %s648_s19 = sshll.u32 %s978_s6, 4  ;;  %s649_s19 = int_to_ptr.vmem [resolvable:$true] %s648_s19 }
  0x7d   :  { %726 = vmatpush3.bf16.msra.mxu0 %v814_v49  ;;  %s937_s20 = scalar_lea.vmem %s649_s19, 128  ;;  %p942_p13 = scmp.lt.s32.totalorder %s649_s19, %s649_s19 }
  0x7e   :  { %400 = vmatpush1.bf16.msra.mxu1 %v781_v23  ;;  %727 = vmatprep.subr.bf16.mxu0 %v815_v3  ;;  %p938_p12 = scmp.ne.s32.totalorder %s649_s19, %s937_s20  ;;  %p943_p0 = scmp.lt.s32.totalorder %s937_s20, %s937_s20 }
  0x7f   :  { %401 = vmatprep.subr.bf16.mxu1 %v782_v24 }
  0x80   :  { %p944_p1 = por %p943_p0, %p942_p13 }
  0x81   :  { %728 = vmatpush3.bf16.msra.mxu0 %v816_v4 }
  0x82   :  { %402 = vmatpush1.bf16.msra.mxu1 %v784_v25  ;;  %729 = vmatprep.subr.bf16.mxu0 %v817_v5  ;;  %p945_p2 = pnand %p944_p1, %p938_p12 }
  0x83   :  { %403 = vmatprep.subr.bf16.mxu1 %v785_v26 }
  0x85   :  { %730 = vmatpush3.bf16.msra.mxu0 %v818_v6 }
  0x86   :  { %404 = vmatpush1.bf16.msra.mxu1 %v787_v27 }
  0x87   :  { %405 = vmatprep.subr.bf16.mxu1 %v788_v28 }
  0x8a   :  { %406 = vmatpush1.bf16.msra.mxu1 %v790_v29 }
  0x8b   :  { %407 = vmatprep.subr.bf16.mxu1 %v791_v30 }
  0x8e   :  { %408 = vmatpush1.bf16.msra.mxu1 %v793_v31 }
  0x8f   :  { %409 = vmatprep.subr.bf16.mxu1 %v794_v32 }
  0x92   :  { %410 = vmatpush1.bf16.msra.mxu1 %v796_v33 }
  0x93   :  { %411 = vmatprep.subr.bf16.mxu1 %v797_v34 }
  0x96   :  { %412 = vmatpush1.bf16.msra.mxu1 %v799_v35 }
  0x97   :  { %413 = vmatprep.subr.bf16.mxu1 %v800_v36 }
  0x9a   :  { %414 = vmatpush1.bf16.msra.mxu1 %v802_v37 }
  0xe1   :  { %v612_v33 = vpop.permute.xlu0 %611 }
 0x136   :  { %v167_v57 = vpop.f32.mrb[0].mxu0 }
 0x137   :  { %v168_v58 = vadd.f32 %v167_v57, %v102_v55  ;;  %v169_v59 = vpop.f32.mrb[1].mxu0 }
 0x138   :  { %v170_v60 = vadd.f32 %v169_v59, %v106_v56  ;;  %v171_v61 = vpop.f32.mrb[2].mxu0 }
 0x139   :  { %v174_v62 = vmax.f32 %v168_v58, 0.0  ;;  %v172_v63 = vpop.f32.mrb[3].mxu0 }
 0x13a   :  { %v175_v0 = vmax.f32 %v170_v60, 0.0 }
 0x13b   :  { %v176_v2 = vpack.c.bf16 %v174_v62, %v174_v62 }
 0x13c   :  { %v177_v1 = vpack.c.bf16 %v175_v0, %v175_v0 }
 0x13e   :  { %415 = vmatprep.mubr.bf16.mxu1 %v177_v1 }
 0x13f   :  { %416 = vmatmul.mubr.bf16.vlgmr.msra.gmra.mrb[0].mxu1 %v176_v2 }
 0x212   :  { %v417_v11 = vpop.f32.mrb[0].mxu1 }
 0x213   :  { %v418_v12 = vadd.f32 %v417_v11, %v216_v9  ;;  %v419_v13 = vpop.f32.mrb[1].mxu1 }
 0x214   :  { %v420_v14 = vadd.f32 %v419_v13, %v220_v10  ;;  %v421_v15 = vpop.f32.mrb[2].mxu1 }
 0x215   :  { %v424_v16 = vmax.f32 %v418_v12, 0.0  ;;  %v422_v17 = vpop.f32.mrb[3].mxu1 }
 0x216   :  { %v425_v18 = vmax.f32 %v420_v14, 0.0 }
 0x217   :  { %v426_v20 = vpack.c.bf16 %v424_v16, %v424_v16 }
 0x218   :  { %v427_v19 = vpack.c.bf16 %v425_v18, %v425_v18 }
 0x21a   :  { %595 = vmatprep.mubr.bf16.mxu0 %v427_v19 }
 0x21b   :  { %596 = vmatmul.mubr.bf16.vlgmr.msra.gmra.mrb[4].mxu0 %v426_v20 }
 0x2ee   :  { %v731_v21 = vpop.f32.mrb[4].mxu0 }
 0x2ef   :  { %v732_v23 = vpop.f32.mrb[5].mxu0 }
 0x2f0   :  { %v733_v24 = vadd.f32 %v732_v23, %v731_v21  ;;  %v734_v25 = vpop.f32.mrb[6].mxu0 }
 0x2f1   :  { %v735_v26 = vpop.f32.mrb[7].mxu0 }
 0x2f2   :  { %v598_v27 = vadd.f32 %v733_v24, %v697_v22 }
 0x2f4   :  { %819 = vtanh.f32 %v598_v27 }
 0x2fe   :  { %v820_v28 = vpop.eup %819 }
 0x2ff   :  { %v604_v29 = vadd.f32 1.0, %v820_v28 }
 0x301   :  { %v605_v30 = vmul.f32 11.0, %v604_v29 }
 0x303   :  { %v606_v31 = vadd.f32 -20.0, %v605_v30 }
 0x305   :  { %624 = vrot.lane.b32.xlu1 %v606_v31, %s977_s3  ;;  %v607_v32 = vmul.f32 1.442695, %v606_v31 }
 0x307   :  { %821 = vpow2.f32 %v607_v32 }
 0x311   :  { %v822_v34 = vpop.eup %821 }
 0x312   :  { %v614_v35 = vmul.f32 %v822_v34, %v612_v33 }
 0x314   :  { %616 = vrot.lane.b32.xlu0 %v614_v35, %s977_s3 }
 0x377   :  { %v625_v44 = vpop.permute.xlu1 %624 }
 0x378   :  { %v627_v45 = vsub.f32 %v622_v43, %v625_v44 }
 0x37a   :  { %v714_v47 = vadd.f32 -0.9189385, %v627_v45 }
 0x386   :  { %v617_v36 = vpop.permute.xlu0 %616 }
 0x387   :  { %v619_v37 = vadd.f32 %v820_v28, %v617_v36 }
 0x389   :  { %823 = vtanh.f32 %v619_v37 }
 0x393   :  { %v824_v38 = vpop.eup %823 }
 0x394   :  { %v629_v39 = vmul.f32 %v824_v38, %v824_v38 }
 0x396   :  { %v630_v40 = vsub.f32 1.0, %v629_v39 }
 0x398   :  { %v631_v41 = vadd.f32 1e-07, %v630_v40 }
 0x39a   :  { %825 = vlog2.f32 %v631_v41 }
 0x3a4   :  { %v826_v46 = vpop.eup %825 }
 0x3a5   :  { %v633_v48 = vmul.f32 0.6931472, %v826_v46 }
 0x3a7   :  { %v634_v49 = vsub.f32 %v714_v47, %v633_v48 }
 0x3a9   :  { %v636_v50 = vsel %vm635_vm1, %v634_v49, 0.0 }
 0x3aa   :  { %637 = vadd.xlane.f32.xlu1 %v636_v50 }
 0x437   :  { %v638_v51 = vpop.xlane.xlu1 %637 }
 0x438   :  { %v639_v52 = vsel %vm635_vm1, %v824_v38, %v638_v51 }
 0x439   :  { %641 = vst.msk [vmem:[#allocation11] sm:$0xff] %vm640_vm2, %v639_v52 }
 0x43a   :  { %948 = shalt.err (!%p945_p2)
}
 0x43b   :  { %s949_s23 = scalar_lea.hbm %s1114_s7, 128 }
 0x43c   :  { %p950_p3 = scmp.ne.s32.totalorder %s1114_s7, %s949_s23  ;;  %p953_p4 = scmp.lt.u32.totalorder %s949_s23, %s1114_s7 }
 0x43e   :  { %p955_p5 = pnand %p953_p4, %p950_p3 }
 0x440   :  { %958 = shalt.err (!%p955_p5)
}
 0x441   :  { %651 = dma.vmem_to_hbm [thread:$0]  %s649_s19, 128, %s1114_s7, [#allocation4]  }
 0x442   :  { %965 = dma.done.wait [#allocation4], 128  }
 0x443   :  { %966 = vsyncadd [#allocation4], 4294967168 }
 0x444   :  { %655 = vsyncpa [#allocation3], 1 }
 0x445   :  { %656 = vsyncpa [#allocation6], 1 }
 0x446   :  { %657 = vsyncpa [#allocation9], 1 }
 0x447   :  { %658 = vsyncpa [#allocation4], 1 }

</bundles_post_ra>
